<compile_context>
chip_gen: v5e
topology: v5e:2x2
jax: 0.10.0
libtpu: 0.0.40
codegen_flags: <defaults>
</compile_context>

<pallas_src>
import math

import jax
import jax.numpy as jnp
from jax.experimental import pallas as pl
from jax.experimental.pallas import tpu as pltpu

_LANE = 128
_SUBLANE = 8
_VMEM_LIMIT = 48 * 1024 * 1024  # leave headroom vs v7x's 64 MiB physical VMEM


def _round_up(v, m):
    return ((v + m - 1) // m) * m


def _pick_tile(n_pad, max_tile):
    """Largest multiple of 128 <= max_tile that divides n_pad (n_pad % 128 == 0)."""
    t = min(max_tile, n_pad)
    while n_pad % t:
        t -= _LANE
    return t


def _pad2(a, rows, cols):
    return jnp.pad(a, ((0, rows - a.shape[0]), (0, cols - a.shape[1])))


# ----------------------------------------------------------------------------
# Pallas kernels
# ----------------------------------------------------------------------------
def _sage_conv_kernel(a_ref, x_ref, xd_ref, dinv_ref, wl_ref, wr_ref, bl_ref,
                      o_ref, acc_ref):
    """Tiled fused SAGEConv: relu(((A @ X) * 1/deg) @ W_l + b_l + X_dst @ W_r).

    Grid: (row tiles, src/K tiles).  acc_ref accumulates the neighbor sum for the
    current row tile across the K axis; the weight matmuls / bias / relu happen
    once at the last K step on the already-resident tile.
    """
    k = pl.program_id(1)

    @pl.when(k == 0)
    def _init():
        acc_ref[...] = jnp.zeros_like(acc_ref)

    # bf16 x bf16 -> f32 accumulation on the MXU (A holds exact small-int counts).
    acc_ref[...] += jnp.dot(a_ref[...], x_ref[...],
                            preferred_element_type=jnp.float32)

    @pl.when(k == pl.num_programs(1) - 1)
    def _finalize():
        aggr = acc_ref[...] * dinv_ref[...]            # exact f32 1/deg scaling
        h = jnp.dot(aggr, wl_ref[...], preferred_element_type=jnp.float32)
        h = h + bl_ref[...]
        h = h + jnp.dot(xd_ref[...].astype(jnp.float32), wr_ref[...],
                        preferred_element_type=jnp.float32)
        o_ref[...] = jnp.maximum(h, 0.0).astype(o_ref.dtype)


def _pool_lin_kernel(p_ref, h_ref, cinv_ref, w_ref, b_ref, o_ref, acc_ref):
    """Fused global_mean_pool + Linear: ((P @ h) * 1/count) @ W + b, tiled over N."""
    k = pl.program_id(0)

    @pl.when(k == 0)
    def _init():
        acc_ref[...] = jnp.zeros_like(acc_ref)

    acc_ref[...] += jnp.dot(p_ref[...], h_ref[...],
                            preferred_element_type=jnp.float32)

    @pl.when(k == pl.num_programs(0) - 1)
    def _finalize():
        pooled = acc_ref[...] * cinv_ref[...]
        o_ref[...] = (jnp.dot(pooled, w_ref[...],
                              preferred_element_type=jnp.float32) + b_ref[...])


# ----------------------------------------------------------------------------
# pallas_call wrappers
# ----------------------------------------------------------------------------
def sage_conv(a_ind, x, deg_inv, w_l, w_r, b_l, *, max_tm=256, max_tk=512):
    n_pad = a_ind.shape[0]
    cin = x.shape[1]
    hid = w_l.shape[1]
    tm = _pick_tile(n_pad, max_tm)
    tk = _pick_tile(n_pad, max_tk)
    grid = (n_pad // tm, n_pad // tk)

    flops = 2 * n_pad * n_pad * cin + 4 * n_pad * cin * hid
    bytes_accessed = (
        a_ind.size * a_ind.dtype.itemsize
        + 2 * x.size * x.dtype.itemsize
        + n_pad * hid * 2
        + (w_l.size + w_r.size + b_l.size + deg_inv.size) * 4
    )

    return pl.pallas_call(
        _sage_conv_kernel,
        out_shape=jax.ShapeDtypeStruct((n_pad, hid), jnp.bfloat16),
        grid_spec=pltpu.PrefetchScalarGridSpec(
            num_scalar_prefetch=0,
            grid=grid,
            in_specs=[
                pl.BlockSpec((tm, tk), lambda i, k: (i, k)),    # A tile (dst x src)
                pl.BlockSpec((tk, cin), lambda i, k: (k, 0)),   # X (src rows)
                pl.BlockSpec((tm, cin), lambda i, k: (i, 0)),   # X (dst rows, root branch)
                pl.BlockSpec((tm, 1), lambda i, k: (i, 0)),     # 1/deg
                pl.BlockSpec((cin, hid), lambda i, k: (0, 0)),  # W_l
                pl.BlockSpec((cin, hid), lambda i, k: (0, 0)),  # W_r
                pl.BlockSpec((1, hid), lambda i, k: (0, 0)),    # b_l
            ],
            out_specs=pl.BlockSpec((tm, hid), lambda i, k: (i, 0)),
            scratch_shapes=[pltpu.VMEM((tm, cin), jnp.float32)],
        ),
        compiler_params=pltpu.CompilerParams(
            dimension_semantics=("parallel", "arbitrary"),
            vmem_limit_bytes=_VMEM_LIMIT,
        ),
        cost_estimate=pl.CostEstimate(
            flops=flops, transcendentals=0, bytes_accessed=bytes_accessed),
    )(a_ind, x, x, deg_inv, w_l, w_r, b_l)


def pool_and_lin(pool_ind, h, cnt_inv, w_lin, b_lin, *, max_tk=512):
    g_pad, n_pad = pool_ind.shape
    hid = h.shape[1]
    out = w_lin.shape[1]
    tk = _pick_tile(n_pad, max_tk)
    grid = (n_pad // tk,)

    flops = 2 * g_pad * n_pad * hid + 2 * g_pad * hid * out
    bytes_accessed = (
        pool_ind.size * 2 + h.size * 2
        + (w_lin.size + b_lin.size + cnt_inv.size) * 4
        + g_pad * out * 4
    )

    return pl.pallas_call(
        _pool_lin_kernel,
        out_shape=jax.ShapeDtypeStruct((g_pad, out), jnp.float32),
        grid_spec=pltpu.PrefetchScalarGridSpec(
            num_scalar_prefetch=0,
            grid=grid,
            in_specs=[
                pl.BlockSpec((g_pad, tk), lambda k: (0, k)),   # P indicator
                pl.BlockSpec((tk, hid), lambda k: (k, 0)),     # node features
                pl.BlockSpec((g_pad, 1), lambda k: (0, 0)),    # 1/count
                pl.BlockSpec((hid, out), lambda k: (0, 0)),    # W_lin
                pl.BlockSpec((1, out), lambda k: (0, 0)),      # b_lin
            ],
            out_specs=pl.BlockSpec((g_pad, out), lambda k: (0, 0)),
            scratch_shapes=[pltpu.VMEM((g_pad, hid), jnp.float32)],
        ),
        compiler_params=pltpu.CompilerParams(
            dimension_semantics=("arbitrary",),
            vmem_limit_bytes=_VMEM_LIMIT,
        ),
        cost_estimate=pl.CostEstimate(
            flops=flops, transcendentals=0, bytes_accessed=bytes_accessed),
    )(pool_ind, h, cnt_inv, w_lin, b_lin)


# ----------------------------------------------------------------------------
# Graph operators (glue, built ONCE outside the hot path)
# ----------------------------------------------------------------------------
def build_graph_operators(edge_index, batch, num_nodes, num_graphs):
    n_pad = _round_up(max(num_nodes, _LANE), _LANE)
    g_pad = _round_up(max(num_graphs, _SUBLANE), _SUBLANE)

    src = edge_index[0]
    dst = edge_index[1]
    adj = jnp.zeros((n_pad, n_pad), jnp.float32).at[dst, src].add(1.0)
    deg = adj.sum(axis=1, keepdims=True)
    deg_inv = 1.0 / jnp.maximum(deg, 1.0)            # f32; isolated/padded rows -> mean 0
    a_ind = adj.astype(jnp.bfloat16)                 # small integer counts: exact in bf16

    batch_pad = jnp.full((n_pad,), -1, jnp.int32).at[:num_nodes].set(
        batch.astype(jnp.int32))
    onehot = batch_pad[None, :] == jnp.arange(g_pad, dtype=jnp.int32)[:, None]
    pool_ind = onehot.astype(jnp.bfloat16)
    counts = onehot.sum(axis=1, keepdims=True).astype(jnp.float32)
    cnt_inv = 1.0 / jnp.maximum(counts, 1.0)
    return a_ind, deg_inv, pool_ind, cnt_inv


# ----------------------------------------------------------------------------
# Full forward (eval mode)
# ----------------------------------------------------------------------------
@jax.jit
def sage_forward(x, a_ind, deg_inv, pool_ind, cnt_inv, params):
    n_pad = a_ind.shape[0]
    cin_pad = _round_up(x.shape[1], _LANE)

    h = _pad2(x.astype(jnp.bfloat16), n_pad, cin_pad)

    for (w_l, b_l, w_r) in params["convs"]:
        ci, hd = w_l.shape
        ci_pad = _round_up(ci, _LANE)
        hd_pad = _round_up(hd, _LANE)
        h = sage_conv(
            a_ind, h, deg_inv,
            _pad2(w_l, ci_pad, hd_pad),
            _pad2(w_r, ci_pad, hd_pad),
            _pad2(b_l, 1, hd_pad),
        )

    # dropout(p=0.5, training=False) == identity
    hd, out = params["lin_w"].shape
    hd_pad = _round_up(hd, _LANE)
    out_pad = _round_up(out, _LANE)
    return pool_and_lin(
        pool_ind, h, cnt_inv,
        _pad2(params["lin_w"], hd_pad, out_pad),
        _pad2(params["lin_b"], 1, out_pad),
    )  # (g_pad, out_pad); caller slices to (num_graphs, out_feats)


# ----------------------------------------------------------------------------
# Deterministic parameter init (shapes per SAGE.__init__ / PyG SAGEConv)
# ----------------------------------------------------------------------------
def _init_linear(key, fan_in, fan_out, bias=True):
    k_w, k_b = jax.random.split(key)
    bound = 1.0 / math.sqrt(fan_in)
    w = jax.random.uniform(k_w, (fan_in, fan_out), jnp.float32, -bound, bound)
    b = (jax.random.uniform(k_b, (1, fan_out), jnp.float32, -bound, bound)
         if bias else None)
    return w, b


def init_sage_params(key, in_feats, hidden, out_feats, num_layers):
    keys = jax.random.split(key, 2 * num_layers + 1)
    convs = []
    for i in range(num_layers):
        ch_in = in_feats if i == 0 else hidden
        w_l, b_l = _init_linear(keys[2 * i], ch_in, hidden, bias=True)      # lin_l
        w_r, _ = _init_linear(keys[2 * i + 1], ch_in, hidden, bias=False)   # lin_r
        convs.append((w_l, b_l, w_r))
    lin_w, lin_b = _init_linear(keys[-1], hidden, out_feats, bias=True)
    return {"convs": convs, "lin_w": lin_w, "lin_b": lin_b}


# ----------------------------------------------------------------------------
if __name__ == "__main__":
    key = jax.random.PRNGKey(0)
    k_x, k_e, k_p = jax.random.split(key, 3)

    # small synthetic graph batch
    num_nodes = 16
    num_edges = 48
    in_feats = 4
    hidden = 32
    out_feats = 8
    num_layers = 2
    num_graphs = 2

    x = jax.random.normal(k_x, (num_nodes, in_feats), jnp.float32)
    edge_index = jax.random.randint(k_e, (2, num_edges), 0, num_nodes, jnp.int32)
    batch = jnp.concatenate(
        [jnp.zeros((num_nodes // 2,), jnp.int32),
         jnp.ones((num_nodes // 2,), jnp.int32)]
    )

    params = init_sage_params(k_p, in_feats, hidden, out_feats, num_layers)

    # graph operators built once, outside the per-forward hot path
    a_ind, deg_inv, pool_ind, cnt_inv = build_graph_operators(
        edge_index, batch, num_nodes, num_graphs)

    out_padded = sage_forward(x, a_ind, deg_inv, pool_ind, cnt_inv, params)
    out = out_padded[:num_graphs, :out_feats]
    jax.block_until_ready(out)
    assert out.shape == (num_graphs, out_feats)
    print("KERNEL_OK")
</pallas_src>

<mosaic_0001>
module attributes {stable_mosaic.version = 11 : i64} {
  func.func @_sage_conv_kernel(%arg0: i32, %arg1: i32, %arg2: memref<128x128xbf16, #tpu.memory_space<vmem>>, %arg3: memref<128x128xbf16, #tpu.memory_space<vmem>>, %arg4: memref<128x128xbf16, #tpu.memory_space<vmem>>, %arg5: memref<128x1xf32, #tpu.memory_space<vmem>>, %arg6: memref<128x128xf32, #tpu.memory_space<vmem>>, %arg7: memref<128x128xf32, #tpu.memory_space<vmem>>, %arg8: memref<1x128xf32, #tpu.memory_space<vmem>>, %arg9: memref<128x128xbf16, #tpu.memory_space<vmem>>, %arg10: memref<128x128xf32, #tpu.memory_space<vmem>>) attributes {dimension_semantics = [#tpu.dimension_semantics<parallel>, #tpu.dimension_semantics<arbitrary>], iteration_bounds = array<i64: 1, 1>, scalar_prefetch = 0 : i64, scratch_operands = 1 : i64, tpu.core_type = #tpu.core_type<tc>, window_params = [{transform_indices = @transform_0, window_bounds = array<i64: 128, 128>}, {transform_indices = @transform_1, window_bounds = array<i64: 128, 128>}, {transform_indices = @transform_2, window_bounds = array<i64: 128, 128>}, {transform_indices = @transform_3, window_bounds = array<i64: 128, 1>}, {pipeline_mode = #tpu.pipeline_mode<synchronous>, transform_indices = @transform_4, window_bounds = array<i64: 128, 128>}, {pipeline_mode = #tpu.pipeline_mode<synchronous>, transform_indices = @transform_5, window_bounds = array<i64: 128, 128>}, {pipeline_mode = #tpu.pipeline_mode<synchronous>, transform_indices = @transform_6, window_bounds = array<i64: 1, 128>}, {transform_indices = @transform_7, window_bounds = array<i64: 128, 128>}]} {
    %c0_i32 = arith.constant 0 : i32
    %0 = arith.cmpi eq, %arg1, %c0_i32 : i32
    %1 = arith.extui %0 : i1 to i32
    %c0_i32_0 = arith.constant 0 : i32
    %2 = arith.cmpi ne, %1, %c0_i32_0 : i32
    scf.if %2 {
      %cst_10 = arith.constant 0.000000e+00 : f32
      %12 = vector.broadcast %cst_10 : f32 to vector<128x128xf32>
      %c0_11 = arith.constant 0 : index
      %c0_12 = arith.constant 0 : index
      %13 = vector.load %arg10[%c0_11, %c0_12] : memref<128x128xf32, #tpu.memory_space<vmem>>, vector<128x128xf32>
      tpu.vector_store %arg10[%c0_11, %c0_12], %12 {strides = array<i32>} : memref<128x128xf32, #tpu.memory_space<vmem>>, vector<128x128xf32>,
    } else {
    }
    %c0 = arith.constant 0 : index
    %c0_1 = arith.constant 0 : index
    %3 = vector.load %arg10[%c0, %c0_1] : memref<128x128xf32, #tpu.memory_space<vmem>>, vector<128x128xf32>
    %c0_2 = arith.constant 0 : index
    %c0_3 = arith.constant 0 : index
    %4 = vector.load %arg2[%c0_2, %c0_3] : memref<128x128xbf16, #tpu.memory_space<vmem>>, vector<128x128xbf16>
    %c0_4 = arith.constant 0 : index
    %c0_5 = arith.constant 0 : index
    %5 = vector.load %arg3[%c0_4, %c0_5] : memref<128x128xbf16, #tpu.memory_space<vmem>>, vector<128x128xbf16>
    %cst = arith.constant dense<0.000000e+00> : vector<128x128xf32>
    %6 = tpu.matmul %4, %5, %cst {dimension_numbers = #tpu.dot_dimension_numbers<[1], [0], [0], [1], [0, 0, 1, 1], [], []>} : vector<128x128xbf16>, vector<128x128xbf16>, vector<128x128xf32> -> vector<128x128xf32>
    %7 = arith.addf %3, %6 : vector<128x128xf32>
    %c0_6 = arith.constant 0 : index
    %c0_7 = arith.constant 0 : index
    %8 = vector.load %arg10[%c0_6, %c0_7] : memref<128x128xf32, #tpu.memory_space<vmem>>, vector<128x128xf32>
    tpu.vector_store %arg10[%c0_6, %c0_7], %7 {strides = array<i32>} : memref<128x128xf32, #tpu.memory_space<vmem>>, vector<128x128xf32>,
    %c0_i32_8 = arith.constant 0 : i32
    %9 = arith.cmpi eq, %arg1, %c0_i32_8 : i32
    %10 = arith.extui %9 : i1 to i32
    %c0_i32_9 = arith.constant 0 : i32
    %11 = arith.cmpi ne, %10, %c0_i32_9 : i32
    scf.if %11 {
      %c0_10 = arith.constant 0 : index
      %c0_11 = arith.constant 0 : index
      %12 = vector.load %arg10[%c0_10, %c0_11] : memref<128x128xf32, #tpu.memory_space<vmem>>, vector<128x128xf32>
      %c0_12 = arith.constant 0 : index
      %c0_13 = arith.constant 0 : index
      %13 = vector.load %arg5[%c0_12, %c0_13] : memref<128x1xf32, #tpu.memory_space<vmem>>, vector<128x1xf32>
      %14 = vector.broadcast %13 : vector<128x1xf32> to vector<128x128xf32>
      %15 = arith.mulf %12, %14 : vector<128x128xf32>
      %c0_14 = arith.constant 0 : index
      %c0_15 = arith.constant 0 : index
      %16 = vector.load %arg6[%c0_14, %c0_15] : memref<128x128xf32, #tpu.memory_space<vmem>>, vector<128x128xf32>
      %cst_16 = arith.constant dense<0.000000e+00> : vector<128x128xf32>
      %17 = tpu.matmul %15, %16, %cst_16 {dimension_numbers = #tpu.dot_dimension_numbers<[1], [0], [0], [1], [0, 0, 1, 1], [], []>} : vector<128x128xf32>, vector<128x128xf32>, vector<128x128xf32> -> vector<128x128xf32>
      %c0_17 = arith.constant 0 : index
      %c0_18 = arith.constant 0 : index
      %18 = vector.load %arg8[%c0_17, %c0_18] : memref<1x128xf32, #tpu.memory_space<vmem>>, vector<1x128xf32>
      %19 = vector.broadcast %18 : vector<1x128xf32> to vector<128x128xf32>
      %20 = arith.addf %17, %19 : vector<128x128xf32>
      %c0_19 = arith.constant 0 : index
      %c0_20 = arith.constant 0 : index
      %21 = vector.load %arg4[%c0_19, %c0_20] : memref<128x128xbf16, #tpu.memory_space<vmem>>, vector<128x128xbf16>
      %22 = arith.extf %21 : vector<128x128xbf16> to vector<128x128xf32>
      %c0_21 = arith.constant 0 : index
      %c0_22 = arith.constant 0 : index
      %23 = vector.load %arg7[%c0_21, %c0_22] : memref<128x128xf32, #tpu.memory_space<vmem>>, vector<128x128xf32>
      %cst_23 = arith.constant dense<0.000000e+00> : vector<128x128xf32>
      %24 = tpu.matmul %22, %23, %cst_23 {dimension_numbers = #tpu.dot_dimension_numbers<[1], [0], [0], [1], [0, 0, 1, 1], [], []>} : vector<128x128xf32>, vector<128x128xf32>, vector<128x128xf32> -> vector<128x128xf32>
      %25 = arith.addf %20, %24 : vector<128x128xf32>
      %cst_24 = arith.constant 0.000000e+00 : f32
      %26 = vector.broadcast %cst_24 : f32 to vector<128x128xf32>
      %27 = arith.maximumf %25, %26 : vector<128x128xf32>
      %28 = arith.truncf %27 : vector<128x128xf32> to vector<128x128xbf16>
      %c0_25 = arith.constant 0 : index
      %c0_26 = arith.constant 0 : index
      %29 = vector.load %arg9[%c0_25, %c0_26] : memref<128x128xbf16, #tpu.memory_space<vmem>>, vector<128x128xbf16>
      tpu.vector_store %arg9[%c0_25, %c0_26], %28 {strides = array<i32>} : memref<128x128xbf16, #tpu.memory_space<vmem>>, vector<128x128xbf16>,
    } else {
    }
    return
  }
  func.func @transform_0(%arg0: i32, %arg1: i32) -> (i32, i32) {
    %c0_i32 = arith.constant 0 : i32
    return %arg0, %arg1 : i32, i32
  }
  func.func @transform_1(%arg0: i32, %arg1: i32) -> (i32, i32) {
    %c0_i32 = arith.constant 0 : i32
    %c0_i32_0 = arith.constant 0 : i32
    return %arg1, %c0_i32 : i32, i32
  }
  func.func @transform_2(%arg0: i32, %arg1: i32) -> (i32, i32) {
    %c0_i32 = arith.constant 0 : i32
    %c0_i32_0 = arith.constant 0 : i32
    return %arg0, %c0_i32 : i32, i32
  }
  func.func @transform_3(%arg0: i32, %arg1: i32) -> (i32, i32) {
    %c0_i32 = arith.constant 0 : i32
    %c0_i32_0 = arith.constant 0 : i32
    return %arg0, %c0_i32 : i32, i32
  }
  func.func @transform_4(%arg0: i32, %arg1: i32) -> (i32, i32) {
    %c0_i32 = arith.constant 0 : i32
    %c0_i32_0 = arith.constant 0 : i32
    %c0_i32_1 = arith.constant 0 : i32
    return %c0_i32, %c0_i32_0 : i32, i32
  }
  func.func @transform_5(%arg0: i32, %arg1: i32) -> (i32, i32) {
    %c0_i32 = arith.constant 0 : i32
    %c0_i32_0 = arith.constant 0 : i32
    %c0_i32_1 = arith.constant 0 : i32
    return %c0_i32, %c0_i32_0 : i32, i32
  }
  func.func @transform_6(%arg0: i32, %arg1: i32) -> (i32, i32) {
    %c0_i32 = arith.constant 0 : i32
    %c0_i32_0 = arith.constant 0 : i32
    %c0_i32_1 = arith.constant 0 : i32
    return %c0_i32, %c0_i32_0 : i32, i32
  }
  func.func @transform_7(%arg0: i32, %arg1: i32) -> (i32, i32) {
    %c0_i32 = arith.constant 0 : i32
    %c0_i32_0 = arith.constant 0 : i32
    return %arg0, %c0_i32 : i32, i32
  }
}

module attributes {stable_mosaic.version = 11 : i64} {
  func.func @_pool_lin_kernel(%arg0: i32, %arg1: memref<8x128xbf16, #tpu.memory_space<vmem>>, %arg2: memref<128x128xbf16, #tpu.memory_space<vmem>>, %arg3: memref<8x1xf32, #tpu.memory_space<vmem>>, %arg4: memref<128x128xf32, #tpu.memory_space<vmem>>, %arg5: memref<1x128xf32, #tpu.memory_space<vmem>>, %arg6: memref<8x128xf32, #tpu.memory_space<vmem>>, %arg7: memref<8x128xf32, #tpu.memory_space<vmem>>) attributes {dimension_semantics = [#tpu.dimension_semantics<arbitrary>], iteration_bounds = array<i64: 1>, scalar_prefetch = 0 : i64, scratch_operands = 1 : i64, tpu.core_type = #tpu.core_type<tc>, window_params = [{transform_indices = @transform_0, window_bounds = array<i64: 8, 128>}, {transform_indices = @transform_1, window_bounds = array<i64: 128, 128>}, {pipeline_mode = #tpu.pipeline_mode<synchronous>, transform_indices = @transform_2, window_bounds = array<i64: 8, 1>}, {pipeline_mode = #tpu.pipeline_mode<synchronous>, transform_indices = @transform_3, window_bounds = array<i64: 128, 128>}, {pipeline_mode = #tpu.pipeline_mode<synchronous>, transform_indices = @transform_4, window_bounds = array<i64: 1, 128>}, {pipeline_mode = #tpu.pipeline_mode<synchronous>, transform_indices = @transform_5, window_bounds = array<i64: 8, 128>}]} {
    %c0_i32 = arith.constant 0 : i32
    %0 = arith.cmpi eq, %arg0, %c0_i32 : i32
    %1 = arith.extui %0 : i1 to i32
    %c0_i32_0 = arith.constant 0 : i32
    %2 = arith.cmpi ne, %1, %c0_i32_0 : i32
    scf.if %2 {
      %cst_10 = arith.constant 0.000000e+00 : f32
      %12 = vector.broadcast %cst_10 : f32 to vector<8x128xf32>
      %c0_11 = arith.constant 0 : index
      %c0_12 = arith.constant 0 : index
      %13 = vector.load %arg7[%c0_11, %c0_12] : memref<8x128xf32, #tpu.memory_space<vmem>>, vector<8x128xf32>
      tpu.vector_store %arg7[%c0_11, %c0_12], %12 {strides = array<i32>} : memref<8x128xf32, #tpu.memory_space<vmem>>, vector<8x128xf32>,
    } else {
    }
    %c0 = arith.constant 0 : index
    %c0_1 = arith.constant 0 : index
    %3 = vector.load %arg7[%c0, %c0_1] : memref<8x128xf32, #tpu.memory_space<vmem>>, vector<8x128xf32>
    %c0_2 = arith.constant 0 : index
    %c0_3 = arith.constant 0 : index
    %4 = vector.load %arg1[%c0_2, %c0_3] : memref<8x128xbf16, #tpu.memory_space<vmem>>, vector<8x128xbf16>
    %c0_4 = arith.constant 0 : index
    %c0_5 = arith.constant 0 : index
    %5 = vector.load %arg2[%c0_4, %c0_5] : memref<128x128xbf16, #tpu.memory_space<vmem>>, vector<128x128xbf16>
    %cst = arith.constant dense<0.000000e+00> : vector<8x128xf32>
    %6 = tpu.matmul %4, %5, %cst {dimension_numbers = #tpu.dot_dimension_numbers<[1], [0], [0], [1], [0, 0, 1, 1], [], []>} : vector<8x128xbf16>, vector<128x128xbf16>, vector<8x128xf32> -> vector<8x128xf32>
    %7 = arith.addf %3, %6 : vector<8x128xf32>
    %c0_6 = arith.constant 0 : index
    %c0_7 = arith.constant 0 : index
    %8 = vector.load %arg7[%c0_6, %c0_7] : memref<8x128xf32, #tpu.memory_space<vmem>>, vector<8x128xf32>
    tpu.vector_store %arg7[%c0_6, %c0_7], %7 {strides = array<i32>} : memref<8x128xf32, #tpu.memory_space<vmem>>, vector<8x128xf32>,
    %c0_i32_8 = arith.constant 0 : i32
    %9 = arith.cmpi eq, %arg0, %c0_i32_8 : i32
    %10 = arith.extui %9 : i1 to i32
    %c0_i32_9 = arith.constant 0 : i32
    %11 = arith.cmpi ne, %10, %c0_i32_9 : i32
    scf.if %11 {
      %c0_10 = arith.constant 0 : index
      %c0_11 = arith.constant 0 : index
      %12 = vector.load %arg7[%c0_10, %c0_11] : memref<8x128xf32, #tpu.memory_space<vmem>>, vector<8x128xf32>
      %c0_12 = arith.constant 0 : index
      %c0_13 = arith.constant 0 : index
      %13 = vector.load %arg3[%c0_12, %c0_13] : memref<8x1xf32, #tpu.memory_space<vmem>>, vector<8x1xf32>
      %14 = vector.broadcast %13 : vector<8x1xf32> to vector<8x128xf32>
      %15 = arith.mulf %12, %14 : vector<8x128xf32>
      %c0_14 = arith.constant 0 : index
      %c0_15 = arith.constant 0 : index
      %16 = vector.load %arg4[%c0_14, %c0_15] : memref<128x128xf32, #tpu.memory_space<vmem>>, vector<128x128xf32>
      %cst_16 = arith.constant dense<0.000000e+00> : vector<8x128xf32>
      %17 = tpu.matmul %15, %16, %cst_16 {dimension_numbers = #tpu.dot_dimension_numbers<[1], [0], [0], [1], [0, 0, 1, 1], [], []>} : vector<8x128xf32>, vector<128x128xf32>, vector<8x128xf32> -> vector<8x128xf32>
      %c0_17 = arith.constant 0 : index
      %c0_18 = arith.constant 0 : index
      %18 = vector.load %arg5[%c0_17, %c0_18] : memref<1x128xf32, #tpu.memory_space<vmem>>, vector<1x128xf32>
      %19 = vector.broadcast %18 : vector<1x128xf32> to vector<8x128xf32>
      %20 = arith.addf %17, %19 : vector<8x128xf32>
      %c0_19 = arith.constant 0 : index
      %c0_20 = arith.constant 0 : index
      %21 = vector.load %arg6[%c0_19, %c0_20] : memref<8x128xf32, #tpu.memory_space<vmem>>, vector<8x128xf32>
      tpu.vector_store %arg6[%c0_19, %c0_20], %20 {strides = array<i32>} : memref<8x128xf32, #tpu.memory_space<vmem>>, vector<8x128xf32>,
    } else {
    }
    return
  }
  func.func @transform_0(%arg0: i32) -> (i32, i32) {
    %c0_i32 = arith.constant 0 : i32
    %c0_i32_0 = arith.constant 0 : i32
    return %c0_i32, %arg0 : i32, i32
  }
  func.func @transform_1(%arg0: i32) -> (i32, i32) {
    %c0_i32 = arith.constant 0 : i32
    %c0_i32_0 = arith.constant 0 : i32
    return %arg0, %c0_i32 : i32, i32
  }
  func.func @transform_2(%arg0: i32) -> (i32, i32) {
    %c0_i32 = arith.constant 0 : i32
    %c0_i32_0 = arith.constant 0 : i32
    %c0_i32_1 = arith.constant 0 : i32
    return %c0_i32, %c0_i32_0 : i32, i32
  }
  func.func @transform_3(%arg0: i32) -> (i32, i32) {
    %c0_i32 = arith.constant 0 : i32
    %c0_i32_0 = arith.constant 0 : i32
    %c0_i32_1 = arith.constant 0 : i32
    return %c0_i32, %c0_i32_0 : i32, i32
  }
  func.func @transform_4(%arg0: i32) -> (i32, i32) {
    %c0_i32 = arith.constant 0 : i32
    %c0_i32_0 = arith.constant 0 : i32
    %c0_i32_1 = arith.constant 0 : i32
    return %c0_i32, %c0_i32_0 : i32, i32
  }
  func.func @transform_5(%arg0: i32) -> (i32, i32) {
    %c0_i32 = arith.constant 0 : i32
    %c0_i32_0 = arith.constant 0 : i32
    %c0_i32_1 = arith.constant 0 : i32
    return %c0_i32, %c0_i32_0 : i32, i32
  }
}

</mosaic_0001>

<bundles_post_ra>
// kernel: sage_forward.3
= control target key start
LH: loop header
LB: loop body
LE: loop exit
PB: predicated region body
PF: predicated region fallthrough
CT: control target
= control target key end

     0   :  { %v879_v1 = vmov 0   ;;  %s1217_s1 = inlined_call_operand.vmem [shape: bf16[128,128], index: 1, kind: input, shape index: {}, may-alias: {1,2}]   ;;  %s1218_s3 = inlined_call_operand.vmem [shape: f32[128,1], index: 3, kind: input, shape index: {}]   ;;  %s1219_s0 = inlined_call_operand.vmem [shape: bf16[128,128], index: 0, kind: input, shape index: {}]   ;;  %s1220_s5 = inlined_call_operand.vmem [shape: f32[128,128], index: 5, kind: input, shape index: {}]   ;;  %s1221_s4 = inlined_call_operand.vmem [shape: f32[128,128], index: 4, kind: input, shape index: {}]   ;;  %s1222_s2 = inlined_call_operand.vmem [shape: bf16[128,128], index: 2, kind: input, shape index: {}, may-alias: {1,2}]   ;;  %s1223_s6 = inlined_call_operand.vmem [shape: f32[1,128], index: 6, kind: input, shape index: {}]   ;;  %s1224_s7 = inlined_call_operand.vmem [shape: bf16[128,128], index: 7, kind: output, shape index: {}]  }
   0x1   :  { %v747_v0 = vld [vmem:[%s1217_s1 + $0x38] sm:$0xff]  ;;  %875 = vset.pattern.permute.xlu0 %v879_v1  ;;  %v290_v2 = vld [vmem:[%s1218_s3] sm:$0xff]  ;;  %876 = vset.pattern.permute.xlu1 %v879_v1  ;;  %v746_v3 = vld [vmem:[%s1217_s1 + $0x30] sm:$0xff] }
   0x2   :  { %308 = vperm.xlu0 %875, %v290_v2   ;;  %877 = vset.pattern.permute.xlu2 %v879_v1  ;;  %v292_v4 = vld [vmem:[%s1218_s3 + $0x10] sm:$0xff]  ;;  %v745_v5 = vld [vmem:[%s1217_s1 + $0x28] sm:$0xff]  ;;  %v293_v7 = vld [vmem:[%s1218_s3 + $0x18] sm:$0xff] }
   0x3   :  { %190 = vmatpush.bf16.msra.mxu0 %v747_v0  ;;  %834 = vmatpush.bf16.msra.mxu3 %v747_v0  ;;  %v291_v6 = vld [vmem:[%s1218_s3 + $0x8] sm:$0xff]  ;;  %v744_v8 = vld [vmem:[%s1217_s1 + $0x20] sm:$0xff]  ;;  %v743_v9 = vld [vmem:[%s1217_s1 + $0x18] sm:$0xff] }
   0x4   :  { %318 = vperm.xlu1 %876, %v292_v4   ;;  %v303_v10 = vld [vmem:[%s1218_s3 + $0x68] sm:$0xff]  ;;  %v302_v12 = vld [vmem:[%s1218_s3 + $0x60] sm:$0xff]  ;;  %v742_v13 = vld [vmem:[%s1217_s1 + $0x10] sm:$0xff] }
   0x5   :  { %v295_v11 = vld [vmem:[%s1218_s3 + $0x28] sm:$0xff]  ;;  %368 = vperm.xlu2 %877, %v302_v12   ;;  %v296_v15 = vld [vmem:[%s1218_s3 + $0x30] sm:$0xff]  ;;  %v305_v16 = vld [vmem:[%s1218_s3 + $0x78] sm:$0xff] }
   0x6   :  { %v741_v14 = vld [vmem:[%s1217_s1 + $0x8] sm:$0xff]  ;;  %v740_v17 = vld [vmem:[%s1217_s1] sm:$0xff]  ;;  %v738_v19 = vld [vmem:[%s1219_s0 + $0x30] sm:$0xff] }
   0x7   :  { %191 = vmatpush.bf16.msra.mxu0 %v746_v3  ;;  %835 = vmatpush.bf16.msra.mxu3 %v746_v3  ;;  %v732_v18 = vld [vmem:[%s1219_s0] sm:$0xff]  ;;  %v299_v21 = vld [vmem:[%s1218_s3 + $0x48] sm:$0xff]  ;;  %v301_v23 = vld [vmem:[%s1218_s3 + $0x58] sm:$0xff] }
   0x8   :  { %v298_v20 = vld [vmem:[%s1218_s3 + $0x40] sm:$0xff]  ;;  %v304_v24 = vld [vmem:[%s1218_s3 + $0x70] sm:$0xff]  ;;  %v733_v25 = vld [vmem:[%s1219_s0 + $0x8] sm:$0xff] }
   0x9   :  { %v294_v22 = vld [vmem:[%s1218_s3 + $0x20] sm:$0xff]  ;;  %v739_v26 = vld [vmem:[%s1219_s0 + $0x38] sm:$0xff]  ;;  %v300_v28 = vld [vmem:[%s1218_s3 + $0x50] sm:$0xff] }
   0xa   :  { %313 = vperm.xlu0 %875, %v291_v6   ;;  %v297_v27 = vld [vmem:[%s1218_s3 + $0x38] sm:$0xff]  ;;  %v734_v29 = vld [vmem:[%s1219_s0 + $0x10] sm:$0xff]  ;;  %v1027_v34 = vld [vmem:[%s1220_s5 + $0x68] sm:$0xff] }
   0xb   :  { %192 = vmatpush.bf16.msra.mxu0 %v745_v5  ;;  %836 = vmatpush.bf16.msra.mxu3 %v745_v5  ;;  %v735_v30 = vld [vmem:[%s1219_s0 + $0x18] sm:$0xff]  ;;  %v1019_v32 = vld [vmem:[%s1220_s5 + $0x70] sm:$0xff]  ;;  %v736_v36 = vld [vmem:[%s1219_s0 + $0x20] sm:$0xff] }
   0xc   :  { %323 = vperm.xlu1 %876, %v293_v7   ;;  %v1013_v31 = vld [vmem:[%s1220_s5 + $0x78] sm:$0xff]  ;;  %v416_v35 = vld [vmem:[%s1221_s4 + $0x70] sm:$0xff]  ;;  %v1039_v37 = vld [vmem:[%s1220_s5 + $0x60] sm:$0xff] }
   0xd   :  { %328 = vperm.xlu2 %877, %v294_v22   ;;  %535 = vmatpush.msra.mxu2 %v1013_v31  ;;  %v417_v33 = vld [vmem:[%s1221_s4 + $0x78] sm:$0xff]  ;;  %v415_v38 = vld [vmem:[%s1221_s4 + $0x68] sm:$0xff]  ;;  %v414_v40 = vld [vmem:[%s1221_s4 + $0x60] sm:$0xff] }
   0xe   :  { %422 = vmatpush.msra.mxu1 %v417_v33  ;;  %v1048_v39 = vld [vmem:[%s1220_s5 + $0x58] sm:$0xff]  ;;  %v1058_v41 = vld [vmem:[%s1220_s5 + $0x50] sm:$0xff]  ;;  %v1067_v43 = vld [vmem:[%s1220_s5 + $0x48] sm:$0xff] }
   0xf   :  { %193 = vmatpush.bf16.msra.mxu0 %v744_v8  ;;  %837 = vmatpush.bf16.msra.mxu3 %v744_v8  ;;  %v413_v42 = vld [vmem:[%s1221_s4 + $0x58] sm:$0xff]  ;;  %v412_v44 = vld [vmem:[%s1221_s4 + $0x50] sm:$0xff]  ;;  %v1075_v45 = vld [vmem:[%s1220_s5 + $0x40] sm:$0xff] }
  0x10   :  { %536 = vmatpush.msra.mxu2 %v1019_v32  ;;  %423 = vmatpush.msra.mxu1 %v416_v35  ;;  %v411_v46 = vld [vmem:[%s1221_s4 + $0x48] sm:$0xff]  ;;  %v1084_v47 = vld [vmem:[%s1220_s5 + $0x38] sm:$0xff]  ;;  %v410_v48 = vld [vmem:[%s1221_s4 + $0x40] sm:$0xff] }
  0x11   :  { %v525_v49 = vld [vmem:[%s1220_s5 + $0x30] sm:$0xff]  ;;  %v409_v50 = vld [vmem:[%s1221_s4 + $0x38] sm:$0xff]  ;;  %v524_v51 = vld [vmem:[%s1220_s5 + $0x28] sm:$0xff] }
  0x12   :  { %373 = vperm.xlu0 %875, %v303_v10   ;;  %537 = vmatpush.msra.mxu2 %v1027_v34  ;;  %v737_v52 = vld [vmem:[%s1219_s0 + $0x28] sm:$0xff]  ;;  %v408_v53 = vld [vmem:[%s1221_s4 + $0x30] sm:$0xff]  ;;  %v523_v54 = vld [vmem:[%s1220_s5 + $0x20] sm:$0xff] }
  0x13   :  { %194 = vmatpush.bf16.msra.mxu0 %v743_v9  ;;  %838 = vmatpush.bf16.msra.mxu3 %v743_v9  ;;  %v407_v55 = vld [vmem:[%s1221_s4 + $0x28] sm:$0xff]  ;;  %v522_v56 = vld [vmem:[%s1220_s5 + $0x18] sm:$0xff]  ;;  %v406_v57 = vld [vmem:[%s1221_s4 + $0x20] sm:$0xff] }
  0x14   :  { %333 = vperm.xlu1 %876, %v295_v11   ;;  %538 = vmatpush.msra.mxu2 %v1039_v37  ;;  %v521_v58 = vld [vmem:[%s1220_s5 + $0x10] sm:$0xff]  ;;  %v405_v59 = vld [vmem:[%s1221_s4 + $0x18] sm:$0xff]  ;;  %v520_v60 = vld [vmem:[%s1220_s5 + $0x8] sm:$0xff] }
  0x15   :  { %378 = vperm.xlu2 %877, %v304_v24   ;;  %424 = vmatpush.msra.mxu1 %v415_v38  ;;  %v404_v61 = vld [vmem:[%s1221_s4 + $0x10] sm:$0xff]  ;;  %v519_v62 = vld [vmem:[%s1220_s5] sm:$0xff]  ;;  %v403_v1 = vld [vmem:[%s1221_s4 + $0x8] sm:$0xff] }
  0x16   :  { %539 = vmatpush.msra.mxu2 %v1048_v39  ;;  %v749_v63 = vld [vmem:[%s1222_s2] sm:$0xff]   ;;  %v820_v4 = vld [vmem:[%s1222_s2 + $0x8] sm:$0xff]   ;;  %v821_v8 = vld [vmem:[%s1222_s2 + $0x10] sm:$0xff]  }
  0x17   :  { %195 = vmatpush.bf16.msra.mxu0 %v742_v13  ;;  %839 = vmatpush.bf16.msra.mxu3 %v742_v13  ;;  %v750_v0 = vunpack.c.l.bf16 %v749_v63  ;;  %v402_v2 = vld [vmem:[%s1221_s4] sm:$0xff]  ;;  %v751_v3 = vunpack.c.h.bf16 %v749_v63  ;;  %v754_v5 = vunpack.c.l.bf16 %v820_v4  ;;  %v755_v6 = vunpack.c.h.bf16 %v820_v4 }
  0x18   :  { %425 = vmatpush.msra.mxu1 %v414_v40  ;;  %540 = vmatpush.msra.mxu2 %v1058_v41  ;;  %v758_v9 = vunpack.c.l.bf16 %v821_v8 }
  0x1a   :  { %338 = vperm.xlu0 %875, %v296_v15   ;;  %426 = vmatpush.msra.mxu1 %v413_v42 }
  0x1b   :  { %196 = vmatpush.bf16.msra.mxu0 %v741_v14  ;;  %840 = vmatpush.bf16.msra.mxu3 %v741_v14  ;;  %v759_v14 = vunpack.c.h.bf16 %v821_v8 }
  0x1c   :  { %383 = vperm.xlu1 %876, %v305_v16   ;;  %541 = vmatpush.msra.mxu2 %v1067_v43 }
  0x1d   :  { %343 = vperm.xlu2 %877, %v297_v27   ;;  %427 = vmatpush.msra.mxu1 %v412_v44 }
  0x1e   :  { %542 = vmatpush.msra.mxu2 %v1075_v45 }
  0x1f   :  { %197 = vmatpush.bf16.msra.mxu0 %v740_v17  ;;  %841 = vmatpush.bf16.msra.mxu3 %v740_v17 }
  0x20   :  { %428 = vmatpush.msra.mxu1 %v411_v46  ;;  %543 = vmatpush.msra.mxu2 %v1084_v47 }
  0x22   :  { %198 = vmatmul.bf16.vlgmr.msra.gmra.mxu0 %v732_v18  ;;  %228 = vmatmul.bf16.vlgmr.msra.gmra.mxu3 %v738_v19 }
  0x23   :  { %348 = vperm.xlu0 %875, %v298_v20   ;;  %842 = vmatpush.msrb.mxu3 %v417_v33 }
  0x24   :  { %353 = vperm.xlu1 %876, %v299_v21   ;;  %429 = vmatpush.msra.mxu1 %v410_v48  ;;  %v822_v21 = vld [vmem:[%s1222_s2 + $0x18] sm:$0xff]  }
  0x25   :  { %358 = vperm.xlu2 %877, %v300_v28   ;;  %843 = vmatpush.msrb.mxu3 %v416_v35 }
  0x26   :  { %544 = vmatpush.msra.mxu2 %v525_v49  ;;  %430 = vmatpush.msra.mxu1 %v409_v50 }
  0x27   :  { %844 = vmatpush.msrb.mxu3 %v415_v38 }
  0x28   :  { %545 = vmatpush.msra.mxu2 %v524_v51  ;;  %431 = vmatpush.msra.mxu1 %v408_v53 }
  0x29   :  { %845 = vmatpush.msrb.mxu3 %v414_v40 }
  0x2a   :  { %546 = vmatpush.msra.mxu2 %v523_v54  ;;  %432 = vmatpush.msra.mxu1 %v407_v55 }
  0x2b   :  { %363 = vperm.xlu0 %875, %v301_v23   ;;  %846 = vmatpush.msrb.mxu3 %v413_v42  ;;  %v762_v23 = vunpack.c.l.bf16 %v822_v21 }
  0x2c   :  { %547 = vmatpush.msra.mxu2 %v522_v56  ;;  %433 = vmatpush.msra.mxu1 %v406_v57 }
  0x2d   :  { %847 = vmatpush.msrb.mxu3 %v412_v44 }
  0x2e   :  { %548 = vmatpush.msra.mxu2 %v521_v58  ;;  %434 = vmatpush.msra.mxu1 %v405_v59 }
  0x2f   :  { %848 = vmatpush.msrb.mxu3 %v411_v46 }
  0x30   :  { %549 = vmatpush.msra.mxu2 %v520_v60  ;;  %435 = vmatpush.msra.mxu1 %v404_v61 }
  0x31   :  { %849 = vmatpush.msrb.mxu3 %v410_v48  ;;  %v824_v48 = vld [vmem:[%s1222_s2 + $0x28] sm:$0xff]  }
  0x32   :  { %203 = vmatmul.bf16.gmra.mxu0 %v733_v25  ;;  %233 = vmatmul.bf16.gmra.mxu3 %v739_v26 }
  0x33   :  { %850 = vmatpush.msrb.mxu3 %v409_v50  ;;  %550 = vmatpush.msra.mxu2 %v519_v62 }
  0x34   :  { %551 = vmatmul.f32.vlgmr.msra.gmra.mxu2 %v750_v0  ;;  %436 = vmatpush.msra.mxu1 %v403_v1 }
  0x35   :  { %851 = vmatpush.msrb.mxu3 %v408_v53 }
  0x36   :  { %437 = vmatpush.msra.mxu1 %v402_v2 }
  0x37   :  { %852 = vmatpush.msrb.mxu3 %v407_v55  ;;  %v771_v55 = vunpack.c.h.bf16 %v824_v48 }
  0x39   :  { %853 = vmatpush.msrb.mxu3 %v406_v57 }
  0x3b   :  { %854 = vmatpush.msrb.mxu3 %v405_v59 }
  0x3c   :  { %554 = vmatmul.f32.gmra.mxu2 %v751_v3 }
  0x3d   :  { %855 = vmatpush.msrb.mxu3 %v404_v61 }
  0x3f   :  { %856 = vmatpush.msrb.mxu3 %v403_v1 }
  0x41   :  { %857 = vmatpush.msrb.mxu3 %v402_v2 }
  0x42   :  { %208 = vmatmul.bf16.gmra.mxu0 %v734_v29  ;;  %v763_v29 = vunpack.c.h.bf16 %v822_v21 }
  0x43   :  { %858 = vmatpush.msra.mxu3 %v1013_v31 }
  0x44   :  { %557 = vmatmul.f32.gmra.mxu2 %v754_v5 }
  0x45   :  { %859 = vmatpush.msra.mxu3 %v1019_v32 }
  0x47   :  { %860 = vmatpush.msra.mxu3 %v1027_v34 }
  0x49   :  { %861 = vmatpush.msra.mxu3 %v1039_v37 }
  0x4b   :  { %862 = vmatpush.msra.mxu3 %v1048_v39 }
  0x4c   :  { %560 = vmatmul.f32.gmra.mxu2 %v755_v6 }
  0x4d   :  { %863 = vmatpush.msra.mxu3 %v1058_v41 }
  0x4f   :  { %864 = vmatpush.msra.mxu3 %v1067_v43  ;;  %v825_v43 = vld [vmem:[%s1222_s2 + $0x30] sm:$0xff]  }
  0x50   :  { %v775_v50 = vunpack.c.h.bf16 %v825_v43 }
  0x51   :  { %865 = vmatpush.msra.mxu3 %v1075_v45  ;;  %v774_v45 = vunpack.c.l.bf16 %v825_v43 }
  0x52   :  { %213 = vmatmul.bf16.gmra.mxu0 %v735_v30 }
  0x53   :  { %866 = vmatpush.msra.mxu3 %v1084_v47 }
  0x54   :  { %563 = vmatmul.f32.gmra.mxu2 %v758_v9 }
  0x55   :  { %867 = vmatpush.msra.mxu3 %v525_v49  ;;  %v770_v49 = vunpack.c.l.bf16 %v824_v48 }
  0x57   :  { %868 = vmatpush.msra.mxu3 %v524_v51 }
  0x59   :  { %869 = vmatpush.msra.mxu3 %v523_v54  ;;  %v826_v54 = vld [vmem:[%s1222_s2 + $0x38] sm:$0xff]  }
  0x5b   :  { %870 = vmatpush.msra.mxu3 %v522_v56  ;;  %v778_v56 = vunpack.c.l.bf16 %v826_v54 }
  0x5c   :  { %566 = vmatmul.f32.gmra.mxu2 %v759_v14 }
  0x5d   :  { %871 = vmatpush.msra.mxu3 %v521_v58 }
  0x5f   :  { %872 = vmatpush.msra.mxu3 %v520_v60  ;;  %v369_v13 = vpop.permute.xlu2 %368  ;;  %v779_v60 = vunpack.c.h.bf16 %v826_v54 }
  0x61   :  { %873 = vmatpush.msra.mxu3 %v519_v62 }
  0x62   :  { %218 = vmatmul.bf16.gmra.mxu0 %v736_v36  ;;  %v823_v36 = vld [vmem:[%s1222_s2 + $0x20] sm:$0xff]  }
  0x63   :  { %v766_v37 = vunpack.c.l.bf16 %v823_v36  ;;  %v767_v44 = vunpack.c.h.bf16 %v823_v36 }
  0x64   :  { %569 = vmatmul.f32.gmra.mxu2 %v762_v23 }
  0x67   :  { %v329_v22 = vpop.permute.xlu2 %328 }
  0x6c   :  { %572 = vmatmul.f32.gmra.mxu2 %v763_v29 }
  0x6f   :  { %v379_v31 = vpop.permute.xlu2 %378 }
  0x72   :  { %223 = vmatmul.bf16.gmra.mxu0 %v737_v52 }
  0x74   :  { %v309_v7 = vpop.permute.xlu0 %308  ;;  %575 = vmatmul.f32.gmra.mxu2 %v766_v37 }
  0x76   :  { %v319_v10 = vpop.permute.xlu1 %318 }
  0x77   :  { %v344_v57 = vpop.permute.xlu2 %343 }
  0x7c   :  { %v314_v15 = vpop.permute.xlu0 %313  ;;  %578 = vmatmul.f32.gmra.mxu2 %v767_v44 }
  0x7e   :  { %v324_v20 = vpop.permute.xlu1 %323 }
  0x7f   :  { %v359_v3 = vpop.permute.xlu2 %358 }
  0x84   :  { %v374_v24 = vpop.permute.xlu0 %373  ;;  %581 = vmatmul.f32.gmra.mxu2 %v770_v49 }
  0x86   :  { %v334_v30 = vpop.permute.xlu1 %333 }
  0x8c   :  { %v339_v51 = vpop.permute.xlu0 %338  ;;  %584 = vmatmul.f32.gmra.mxu2 %v771_v55 }
  0x8e   :  { %v384_v38 = vpop.permute.xlu1 %383 }
  0x95   :  { %v349_v61 = vpop.permute.xlu0 %348 }
  0x96   :  { %v354_v0 = vpop.permute.xlu1 %353 }
  0x9d   :  { %v364_v6 = vpop.permute.xlu0 %363 }
  0x9f   :  { %v199_v11 = vpop.f32.mrf.mxu0 }
  0xa0   :  { %v386_v12 = vmul.f32 %v309_v7, %v199_v11 }
  0xa2   :  { %438 = vmatmul.f32.vlgmr.msra.gmra.mxu1 %v386_v12 }
  0xa5   :  { %v229_v16 = vpop.f32.mrf.mxu3 }
  0xa6   :  { %v398_v17 = vmul.f32 %v369_v13, %v229_v16  ;;  %v1175_v13 = vld [vmem:[%s1223_s6] ss:$0 sm:$0xff] }
  0xa7   :  { %v201_v18 = vpop.f32.mrf.mxu0 }
  0xa8   :  { %v387_v19 = vmul.f32 %v314_v15, %v201_v18  ;;  %474 = vmatmul.f32.vlgmr.msrb.gmra.mxu3 %v398_v17 }
  0xaa   :  { %441 = vmatmul.f32.gmra.mxu1 %v387_v19 }
  0xad   :  { %v231_v25 = vpop.f32.mrf.mxu3 }
  0xae   :  { %v399_v26 = vmul.f32 %v374_v24, %v231_v25 }
  0xaf   :  { %v204_v27 = vpop.f32.mrf.mxu0 }
  0xb0   :  { %v388_v28 = vmul.f32 %v319_v10, %v204_v27  ;;  %477 = vmatmul.f32.gmra.mxu3 %v399_v26 }
  0xb2   :  { %444 = vmatmul.f32.gmra.mxu1 %v388_v28 }
  0xb5   :  { %v234_v32 = vpop.f32.mrf.mxu3 }
  0xb6   :  { %v400_v33 = vmul.f32 %v379_v31, %v234_v32 }
  0xb7   :  { %v206_v34 = vpop.f32.mrf.mxu0  ;;  %v552_v9 = vpop.f32.mrf.mxu2 }
  0xb8   :  { %v389_v35 = vmul.f32 %v324_v20, %v206_v34  ;;  %480 = vmatmul.f32.gmra.mxu3 %v400_v33 }
  0xba   :  { %447 = vmatmul.f32.gmra.mxu1 %v389_v35 }
  0xbd   :  { %v236_v39 = vpop.f32.mrf.mxu3 }
  0xbe   :  { %v401_v40 = vmul.f32 %v384_v38, %v236_v39 }
  0xbf   :  { %v209_v41 = vpop.f32.mrf.mxu0  ;;  %v555_v10 = vpop.f32.mrf.mxu2 }
  0xc0   :  { %v390_v42 = vmul.f32 %v329_v22, %v209_v41  ;;  %483 = vmatmul.f32.gmra.mxu3 %v401_v40 }
  0xc2   :  { %450 = vmatmul.f32.gmra.mxu1 %v390_v42 }
  0xc7   :  { %v211_v46 = vpop.f32.mrf.mxu0  ;;  %v558_v11 = vpop.f32.mrf.mxu2 }
  0xc8   :  { %v391_v47 = vmul.f32 %v334_v30, %v211_v46  ;;  %587 = vmatmul.f32.vlgmr.msra.gmra.mxu3 %v774_v45 }
  0xca   :  { %453 = vmatmul.f32.gmra.mxu1 %v391_v47 }
  0xcf   :  { %v214_v52 = vpop.f32.mrf.mxu0  ;;  %v561_v16 = vpop.f32.mrf.mxu2 }
  0xd0   :  { %v392_v53 = vmul.f32 %v339_v51, %v214_v52  ;;  %590 = vmatmul.f32.gmra.mxu3 %v775_v50 }
  0xd2   :  { %456 = vmatmul.f32.gmra.mxu1 %v392_v53 }
  0xd7   :  { %v216_v58 = vpop.f32.mrf.mxu0  ;;  %v564_v25 = vpop.f32.mrf.mxu2 }
  0xd8   :  { %v393_v59 = vmul.f32 %v344_v57, %v216_v58  ;;  %593 = vmatmul.f32.gmra.mxu3 %v778_v56 }
  0xda   :  { %459 = vmatmul.f32.gmra.mxu1 %v393_v59 }
  0xdf   :  { %v219_v62 = vpop.f32.mrf.mxu0  ;;  %v567_v33 = vpop.f32.mrf.mxu2 }
  0xe0   :  { %v394_v63 = vmul.f32 %v349_v61, %v219_v62  ;;  %596 = vmatmul.f32.gmra.mxu3 %v779_v60 }
  0xe2   :  { %462 = vmatmul.f32.gmra.mxu1 %v394_v63 }
  0xe7   :  { %v221_v1 = vpop.f32.mrf.mxu0  ;;  %v570_v40 = vpop.f32.mrf.mxu2 }
  0xe8   :  { %v395_v2 = vmul.f32 %v354_v0, %v221_v1 }
  0xea   :  { %465 = vmatmul.f32.gmra.mxu1 %v395_v2 }
  0xef   :  { %v224_v4 = vpop.f32.mrf.mxu0  ;;  %v573_v50 = vpop.f32.mrf.mxu2 }
  0xf0   :  { %v396_v5 = vmul.f32 %v359_v3, %v224_v4 }
  0xf2   :  { %468 = vmatmul.f32.gmra.mxu1 %v396_v5 }
  0xf7   :  { %v226_v7 = vpop.f32.mrf.mxu0  ;;  %v576_v63 = vpop.f32.mrf.mxu2 }
  0xf8   :  { %v397_v8 = vmul.f32 %v364_v6, %v226_v7 }
  0xfa   :  { %471 = vmatmul.f32.gmra.mxu1 %v397_v8 }
 0x11f   :  { %v439_v12 = vpop.f32.mrf.mxu1 }
 0x120   :  { %v440_v14 = vadd.f32 %v1175_v13, %v439_v12 }
 0x122   :  { %v600_v17 = vadd.f32 %v552_v9, %v440_v14 }
 0x124   :  { %v616_v21 = vmax.f32 %v600_v17, 0.0 }
 0x127   :  { %v442_v15 = vpop.f32.mrf.mxu1 }
 0x128   :  { %v443_v18 = vadd.f32 %v1175_v13, %v442_v15 }
 0x12a   :  { %v601_v19 = vadd.f32 %v555_v10, %v443_v18  ;;  %v579_v10 = vpop.f32.mrf.mxu2 }
 0x12b   :  { %v475_v20 = vpop.f32.mrf.mxu3 }
 0x12c   :  { %v617_v22 = vmax.f32 %v601_v19, 0.0  ;;  %v476_v51 = vadd.f32 %v1175_v13, %v475_v20 }
 0x12e   :  { %v783_v23 = vpack.c.bf16 %v617_v22, %v616_v21 }
 0x12f   :  { %v445_v24 = vpop.f32.mrf.mxu1 }
 0x130   :  { %784 = vst [vmem:[%s1224_s7] sm:$0xff] %v783_v23   ;;  %v446_v27 = vadd.f32 %v1175_v13, %v445_v24 }
 0x132   :  { %v602_v29 = vadd.f32 %v558_v11, %v446_v27  ;;  %v582_v23 = vpop.f32.mrf.mxu2 }
 0x133   :  { %v478_v26 = vpop.f32.mrf.mxu3 }
 0x134   :  { %v618_v34 = vmax.f32 %v602_v29, 0.0  ;;  %v479_v52 = vadd.f32 %v1175_v13, %v478_v26 }
 0x137   :  { %v448_v28 = vpop.f32.mrf.mxu1 }
 0x138   :  { %v449_v30 = vadd.f32 %v1175_v13, %v448_v28 }
 0x13a   :  { %v603_v31 = vadd.f32 %v561_v16, %v449_v30  ;;  %v585_v28 = vpop.f32.mrf.mxu2 }
 0x13b   :  { %v481_v32 = vpop.f32.mrf.mxu3 }
 0x13c   :  { %v619_v35 = vmax.f32 %v603_v31, 0.0  ;;  %v482_v6 = vadd.f32 %v1175_v13, %v481_v32 }
 0x13e   :  { %v788_v36 = vpack.c.bf16 %v619_v35, %v618_v34 }
 0x13f   :  { %v451_v37 = vpop.f32.mrf.mxu1 }
 0x140   :  { %827 = vst [vmem:[%s1224_s7 + $0x8] sm:$0xff] %v788_v36   ;;  %v452_v39 = vadd.f32 %v1175_v13, %v451_v37 }
 0x142   :  { %v604_v42 = vadd.f32 %v564_v25, %v452_v39 }
 0x143   :  { %v484_v38 = vpop.f32.mrf.mxu3 }
 0x144   :  { %v620_v46 = vmax.f32 %v604_v42, 0.0  ;;  %v485_v7 = vadd.f32 %v1175_v13, %v484_v38 }
 0x147   :  { %v454_v41 = vpop.f32.mrf.mxu1 }
 0x148   :  { %v455_v43 = vadd.f32 %v1175_v13, %v454_v41 }
 0x14a   :  { %v605_v44 = vadd.f32 %v567_v33, %v455_v43 }
 0x14b   :  { %v588_v45 = vpop.f32.mrf.mxu3 }
 0x14c   :  { %v621_v47 = vmax.f32 %v605_v44, 0.0  ;;  %v612_v53 = vadd.f32 %v588_v45, %v476_v51 }
 0x14e   :  { %v793_v48 = vpack.c.bf16 %v621_v47, %v620_v46  ;;  %v628_v57 = vmax.f32 %v612_v53, 0.0 }
 0x14f   :  { %v457_v49 = vpop.f32.mrf.mxu1 }
 0x150   :  { %828 = vst [vmem:[%s1224_s7 + $0x10] sm:$0xff] %v793_v48   ;;  %v458_v55 = vadd.f32 %v1175_v13, %v457_v49 }
 0x152   :  { %v606_v60 = vadd.f32 %v570_v40, %v458_v55 }
 0x153   :  { %v591_v54 = vpop.f32.mrf.mxu3 }
 0x154   :  { %v613_v56 = vadd.f32 %v591_v54, %v479_v52  ;;  %v622_v2 = vmax.f32 %v606_v60, 0.0 }
 0x156   :  { %v629_v58 = vmax.f32 %v613_v56, 0.0 }
 0x157   :  { %v460_v59 = vpop.f32.mrf.mxu1 }
 0x158   :  { %v813_v61 = vpack.c.bf16 %v629_v58, %v628_v57  ;;  %v461_v62 = vadd.f32 %v1175_v13, %v460_v59 }
 0x15a   :  { %832 = vst [vmem:[%s1224_s7 + $0x30] sm:$0xff] %v813_v61   ;;  %v607_v0 = vadd.f32 %v573_v50, %v461_v62 }
 0x15b   :  { %v594_v1 = vpop.f32.mrf.mxu3 }
 0x15c   :  { %v623_v3 = vmax.f32 %v607_v0, 0.0  ;;  %v614_v8 = vadd.f32 %v594_v1, %v482_v6 }
 0x15e   :  { %v798_v4 = vpack.c.bf16 %v623_v3, %v622_v2  ;;  %v630_v14 = vmax.f32 %v614_v8, 0.0 }
 0x15f   :  { %v463_v5 = vpop.f32.mrf.mxu1 }
 0x160   :  { %829 = vst [vmem:[%s1224_s7 + $0x18] sm:$0xff] %v798_v4   ;;  %v464_v11 = vadd.f32 %v1175_v13, %v463_v5 }
 0x162   :  { %v608_v17 = vadd.f32 %v576_v63, %v464_v11 }
 0x163   :  { %v597_v9 = vpop.f32.mrf.mxu3 }
 0x164   :  { %v615_v12 = vadd.f32 %v597_v9, %v485_v7  ;;  %v624_v21 = vmax.f32 %v608_v17, 0.0 }
 0x166   :  { %v631_v15 = vmax.f32 %v615_v12, 0.0 }
 0x167   :  { %v466_v16 = vpop.f32.mrf.mxu1 }
 0x168   :  { %v818_v18 = vpack.c.bf16 %v631_v15, %v630_v14  ;;  %v467_v19 = vadd.f32 %v1175_v13, %v466_v16 }
 0x16a   :  { %833 = vst [vmem:[%s1224_s7 + $0x38] sm:$0xff] %v818_v18   ;;  %v609_v20 = vadd.f32 %v579_v10, %v467_v19 }
 0x16c   :  { %v625_v22 = vmax.f32 %v609_v20, 0.0 }
 0x16e   :  { %v803_v24 = vpack.c.bf16 %v625_v22, %v624_v21 }
 0x16f   :  { %v469_v25 = vpop.f32.mrf.mxu1 }
 0x170   :  { %830 = vst [vmem:[%s1224_s7 + $0x20] sm:$0xff] %v803_v24   ;;  %v470_v26 = vadd.f32 %v1175_v13, %v469_v25 }
 0x172   :  { %v610_v29 = vadd.f32 %v582_v23, %v470_v26 }
 0x174   :  { %v626_v32 = vmax.f32 %v610_v29, 0.0 }
 0x177   :  { %v472_v27 = vpop.f32.mrf.mxu1 }
 0x178   :  { %v473_v30 = vadd.f32 %v1175_v13, %v472_v27 }
 0x17a   :  { %v611_v31 = vadd.f32 %v585_v28, %v473_v30 }
 0x17c   :  { %v627_v33 = vmax.f32 %v611_v31, 0.0 }
 0x17e   :  { %v808_v34 = vpack.c.bf16 %v627_v33, %v626_v32 }
 0x180   :  { %831 = vst [vmem:[%s1224_s7 + $0x28] sm:$0xff] %v808_v34  }

// kernel: sage_forward.5
= control target key start
LH: loop header
LB: loop body
LE: loop exit
PB: predicated region body
PF: predicated region fallthrough
CT: control target
= control target key end

     0   :  { %v245_v2 = vmov 0   ;;  %s361_s0 = inlined_call_operand.vmem [shape: bf16[8,128], index: 0, kind: input, shape index: {}]   ;;  %s362_s1 = inlined_call_operand.vmem [shape: bf16[128,128], index: 1, kind: input, shape index: {}]   ;;  %s363_s2 = inlined_call_operand.vmem [shape: f32[8,1], index: 2, kind: input, shape index: {}]   ;;  %s364_s3 = inlined_call_operand.vmem [shape: f32[128,128], index: 3, kind: input, shape index: {}]   ;;  %s365_s4 = inlined_call_operand.vmem [shape: f32[1,128], index: 4, kind: input, shape index: {}]   ;;  %s366_s5 = inlined_call_operand.hbm [shape: f32[8,128], index: 5, kind: output, shape index: {}]  }
   0x1   :  { %v214_v0 = vld [vmem:[%s362_s1 + $0x38] sm:$0xff]  ;;  %v213_v1 = vld [vmem:[%s362_s1 + $0x30] sm:$0xff]  ;;  %217 = vset.pattern.permute.xlu0 %v245_v2  ;;  %v111_v3 = vld [vmem:[%s363_s2] sm:$0xff] }
   0x2   :  { %92 = vmatpush.bf16.msra.mxu0 %v214_v0  ;;  %v133_v4 = vld [vmem:[%s364_s3 + $0x78] sm:$0xff]  ;;  %v132_v5 = vld [vmem:[%s364_s3 + $0x70] sm:$0xff]  ;;  %114 = vperm.xlu0 %217, %v111_v3   ;;  %v131_v6 = vld [vmem:[%s364_s3 + $0x68] sm:$0xff] }
   0x3   :  { %138 = vmatpush.msra.mxu1 %v133_v4  ;;  %v212_v7 = vld [vmem:[%s362_s1 + $0x28] sm:$0xff]  ;;  %v130_v8 = vld [vmem:[%s364_s3 + $0x60] sm:$0xff] }
   0x5   :  { %139 = vmatpush.msra.mxu1 %v132_v5 }
   0x6   :  { %93 = vmatpush.bf16.msra.mxu0 %v213_v1 }
   0x7   :  { %140 = vmatpush.msra.mxu1 %v131_v6 }
   0x8   :  { %10 = vsyncpa [#allocation4], 0  ;;  %v129_v9 = vld [vmem:[%s364_s3 + $0x58] sm:$0xff]  ;;  %v211_v10 = vld [vmem:[%s362_s1 + $0x20] sm:$0xff]  ;;  %s246_s19 = smov [#allocation3]   ;;  %s166_s22 = sshll.u32 %s366_s5, 4  ;;  %s167_s22 = int_to_ptr.hbm [resolvable:$true] %s166_s22 }
   0x9   :  { %141 = vmatpush.msra.mxu1 %v130_v8  ;;  %v128_v11 = vld [vmem:[%s364_s3 + $0x50] sm:$0xff]  ;;  %v127_v12 = vld [vmem:[%s364_s3 + $0x48] sm:$0xff]  ;;  %v210_v13 = vld [vmem:[%s362_s1 + $0x18] sm:$0xff]  ;;  %s164_s20 = sshll.u32 %s246_s19, 4  ;;  %s165_s20 = int_to_ptr.vmem [resolvable:$true] %s164_s20 }
   0xa   :  { %94 = vmatpush.bf16.msra.mxu0 %v212_v7  ;;  %v126_v14 = vld [vmem:[%s364_s3 + $0x40] sm:$0xff]  ;;  %v125_v15 = vld [vmem:[%s364_s3 + $0x38] sm:$0xff]  ;;  %v209_v16 = vld [vmem:[%s362_s1 + $0x10] sm:$0xff] }
   0xb   :  { %142 = vmatpush.msra.mxu1 %v129_v9  ;;  %v124_v17 = vld [vmem:[%s364_s3 + $0x30] sm:$0xff]  ;;  %v123_v18 = vld [vmem:[%s364_s3 + $0x28] sm:$0xff]  ;;  %v122_v20 = vld [vmem:[%s364_s3 + $0x20] sm:$0xff] }
   0xc   :  { %v208_v19 = vld [vmem:[%s362_s1 + $0x8] sm:$0xff]  ;;  %v121_v21 = vld [vmem:[%s364_s3 + $0x18] sm:$0xff]  ;;  %v207_v22 = vld [vmem:[%s362_s1] sm:$0xff] }
   0xd   :  { %143 = vmatpush.msra.mxu1 %v128_v11  ;;  %v120_v23 = vld [vmem:[%s364_s3 + $0x10] sm:$0xff]  ;;  %v119_v24 = vld [vmem:[%s364_s3 + $0x8] sm:$0xff]  ;;  %v27_v25 = vld [vmem:[%s361_s0] sm:$0xf] }
   0xe   :  { %95 = vmatpush.bf16.msra.mxu0 %v211_v10  ;;  %v118_v26 = vld [vmem:[%s364_s3] sm:$0xff] }
   0xf   :  { %144 = vmatpush.msra.mxu1 %v127_v12  ;;  %v218_v31 = vld [vmem:[%s365_s4] ss:$0 sm:$0xff] }
  0x11   :  { %145 = vmatpush.msra.mxu1 %v126_v14 }
  0x12   :  { %96 = vmatpush.bf16.msra.mxu0 %v210_v13 }
  0x13   :  { %146 = vmatpush.msra.mxu1 %v125_v15 }
  0x15   :  { %147 = vmatpush.msra.mxu1 %v124_v17 }
  0x16   :  { %97 = vmatpush.bf16.msra.mxu0 %v209_v16 }
  0x17   :  { %148 = vmatpush.msra.mxu1 %v123_v18 }
  0x19   :  { %149 = vmatpush.msra.mxu1 %v122_v20 }
  0x1a   :  { %98 = vmatpush.bf16.msra.mxu0 %v208_v19 }
  0x1b   :  { %150 = vmatpush.msra.mxu1 %v121_v21 }
  0x1d   :  { %151 = vmatpush.msra.mxu1 %v120_v23 }
  0x1e   :  { %99 = vmatpush.bf16.msra.mxu0 %v207_v22 }
  0x1f   :  { %152 = vmatpush.msra.mxu1 %v119_v24 }
  0x21   :  { %100 = vmatmul.bf16.vlgmr.msra.gmra.mxu0 %v27_v25  ;;  %153 = vmatpush.msra.mxu1 %v118_v26 }
  0x74   :  { %v115_v27 = vpop.permute.xlu0 %114 }
  0x9e   :  { %v101_v28 = vpop.f32.mrf.mxu0 }
  0x9f   :  { %v117_v29 = vmul.f32 %v115_v27, %v101_v28 }
  0xa1   :  { %154 = vmatmul.f32.vlgmr.msra.gmra.mxu1 %v117_v29 }
  0xa6   :  { %v103_v30 = vpop.f32.mrf.mxu0 }
 0x11e   :  { %v155_v32 = vpop.f32.mrf.mxu1 }
 0x11f   :  { %v156_v33 = vadd.f32 %v218_v31, %v155_v32 }
 0x121   :  { %158 = vst [vmem:[#allocation3] sm:$0xff] %v156_v33 }
 0x122   :  { %169 = dma.vmem_to_hbm [thread:$0]  %s165_s20, 128, %s167_s22, [#allocation4]  }
 0x123   :  { %243 = dma.done.wait [#allocation4], 128  }
 0x124   :  { %244 = vsyncadd [#allocation4], 4294967168 }
 0x125   :  { %174 = vsyncpa [#allocation4], 1 }

</bundles_post_ra>
